<compile_context>
chip_gen: v7x
topology: tpu7x:2x2x1
jax: 0.10.0
libtpu: 0.0.40
codegen_flags: <defaults>
</compile_context>

<pallas_src>
import functools

import jax
import jax.numpy as jnp
from jax.experimental import pallas as pl
from jax.experimental.pallas import tpu as pltpu


def _round_up(x, m):
    return ((x + m - 1) // m) * m


def _ce_kernel(*refs, focal, use_weight, scalar_out, alpha, gamma, n_rows):
    if use_weight:
        x_ref, t_ref, w_ref, out_ref = refs
    else:
        x_ref, t_ref, out_ref = refs
        w_ref = None

    x = x_ref[...].astype(jnp.float32)          # (TILE_N, C)
    t = t_ref[...].astype(jnp.float32)          # (TILE_N, C)

    # Numerically-stable log-softmax over the class (lane) axis; keep the
    # exponentials so the focal path never recomputes them (EUP is the only
    # non-memory unit with real per-element work here).
    m = jnp.max(x, axis=1, keepdims=True)        # XLU lane reduce
    shifted = x - m
    e = jnp.exp(shifted)                         # EUP
    s = jnp.sum(e, axis=1, keepdims=True)        # XLU lane reduce
    logsm = shifted - jnp.log(s)                 # (TILE_N, C)

    if focal:
        p = e * (1.0 / s)                        # softmax reuses e; one div/row
        q = 1.0 - p
        ig = int(gamma)
        if float(gamma) == float(ig) and 0 <= ig <= 16:
            # Integer gamma (default 2): exponentiation-by-squaring on the VPU
            # instead of pow (which lowers to log+exp on the single EUP slot).
            if ig == 0:
                qg = jnp.ones_like(q)
            else:
                qg = None
                base = q
                k = ig
                while k:
                    if k & 1:
                        qg = base if qg is None else qg * base
                    k >>= 1
                    if k:
                        base = base * base
        else:
            qg = q ** gamma
        # Fold the sign and alpha into the cheap (TILE_N, 1) per-row scale.
        per_row = (-alpha) * jnp.sum(t * qg * logsm, axis=1, keepdims=True)
    else:
        term = t * logsm
        if use_weight:
            # w_ref already holds 1/weight -> broadcast multiply, not divide.
            term = term * w_ref[...]
        per_row = -jnp.sum(term, axis=1, keepdims=True)       # (TILE_N, 1)

    if scalar_out:
        i = pl.program_id(0)

        @pl.when(i == 0)
        def _():
            out_ref[...] = jnp.zeros_like(out_ref)

        out_ref[...] += jnp.sum(per_row, axis=0, keepdims=True)

        @pl.when(i == pl.num_programs(0) - 1)
        def _():
            out_ref[...] = out_ref[...] * (1.0 / float(n_rows))
    else:
        # Output block is (TILE_N, 1): contiguous HBM writeback, and only
        # 1/(2C) of the input traffic, so the narrow lane width is cheap.
        out_ref[...] = per_row.astype(out_ref.dtype)


def cross_entropy_loss(x, target, *, focal=False, weight=None, reduce=True,
                       alpha=0.25, gamma=2.0, tile_n=None):
    """Pallas-TPU equivalent of the PyTorch CrossEntropyLoss.forward."""
    n, c = x.shape
    use_weight = (weight is not None) and (not focal)   # module ignores weight when focal

    # Row-tile choice: the biggest multiple of 8 whose footprint (double-buffered
    # x & target DMA windows plus ~6 f32 working arrays kept live by the
    # elementwise pipeline) stays well under the smallest default scoped VMEM
    # (v5e: 16 MiB).  Measured roofline saturates around 512-1024 rows.
    if tile_n is None:
        in_bytes = x.dtype.itemsize + target.dtype.itemsize
        bytes_per_row = 2 * c * in_bytes + 6 * c * 4
        tile_n = max(8, (8 * 1024 * 1024) // max(1, bytes_per_row))
        tile_n = min(1024, tile_n)
    tile_n = max(8, (int(tile_n) // 8) * 8)
    tile_n = min(tile_n, _round_up(n, 8))          # no oversized tile for small N

    n_pad = _round_up(n, tile_n)
    num_tiles = n_pad // tile_n

    if n_pad != n:
        # zero-padded target rows contribute exactly 0 to every loss variant
        pad = ((0, n_pad - n), (0, 0))
        x = jnp.pad(x, pad)
        target = jnp.pad(target, pad)

    in_specs = [
        pl.BlockSpec((tile_n, c), lambda i: (i, 0)),
        pl.BlockSpec((tile_n, c), lambda i: (i, 0)),
    ]
    args = [x, target]
    if use_weight:
        inv_w = (1.0 / jnp.asarray(weight, dtype=jnp.float32)).reshape(1, c)
        in_specs.append(pl.BlockSpec((1, c), lambda i: (0, 0)))
        args.append(inv_w)

    # Single tile: finish the mean in-kernel (resident accumulator, no extra
    # XLA op).  Multiple tiles: keep the grid "parallel" (megacore on v7x) and
    # fold the tiny final sum/N outside the kernel.
    scalar_out = reduce and (num_tiles == 1)

    if scalar_out:
        out_shape = jax.ShapeDtypeStruct((1, 1), jnp.float32)
        out_specs = pl.BlockSpec((1, 1), lambda i: (0, 0))     # resident accumulator
        dims = ("arbitrary",)
    else:
        out_shape = jax.ShapeDtypeStruct((n_pad, 1), jnp.float32)
        out_specs = pl.BlockSpec((tile_n, 1), lambda i: (i, 0))
        dims = ("parallel",)

    kernel = functools.partial(
        _ce_kernel,
        focal=focal, use_weight=use_weight, scalar_out=scalar_out,
        alpha=float(alpha), gamma=float(gamma), n_rows=n,
    )

    out = pl.pallas_call(
        kernel,
        out_shape=out_shape,
        grid=(num_tiles,),
        in_specs=in_specs,
        out_specs=out_specs,
        compiler_params=pltpu.CompilerParams(
            dimension_semantics=dims,
            vmem_limit_bytes=32 * 1024 * 1024,
        ),
    )(*args)

    if scalar_out:
        return out[0, 0]                       # scalar, matches torch.mean
    if reduce:
        # padded rows are exactly 0, so summing the padded output is exact
        return jnp.sum(out) * (1.0 / n)
    return out[:n, 0]                          # (N,), matches per-sample output


def _reference(x, target, *, focal=False, weight=None, reduce=True,
               alpha=0.25, gamma=2.0):
    logsm = jax.nn.log_softmax(x.astype(jnp.float32), axis=1)
    if not focal:
        term = -target * logsm
        if weight is not None:
            term = term / weight.reshape(1, -1)
        out = jnp.sum(term, axis=1)
    else:
        p = jax.nn.softmax(x.astype(jnp.float32), axis=1)
        out = alpha * jnp.sum(-target * (1.0 - p) ** gamma * logsm, axis=1)
    return jnp.mean(out) if reduce else out


if __name__ == "__main__":
    key = jax.random.PRNGKey(0)
    k1, k2, k3 = jax.random.split(key, 3)

    N, C = 8, 32
    logits = jax.random.normal(k1, (N, C), dtype=jnp.float32)
    target = jax.nn.softmax(jax.random.normal(k2, (N, C), dtype=jnp.float32), axis=1)
    weight = jax.random.uniform(k3, (C,), minval=0.5, maxval=1.5, dtype=jnp.float32)

    # 1) default path: focal=False, weight=None, reduce=True (in-kernel mean)
    loss = cross_entropy_loss(logits, target)
    jax.block_until_ready(loss)
    ref = _reference(logits, target)
    assert jnp.allclose(loss, ref, atol=1e-5, rtol=1e-5), (loss, ref)

    # 2) focal path (reduce=True), integer-gamma fast path
    loss_f = cross_entropy_loss(logits, target, focal=True)
    jax.block_until_ready(loss_f)
    ref_f = _reference(logits, target, focal=True)
    assert jnp.allclose(loss_f, ref_f, atol=1e-5, rtol=1e-5), (loss_f, ref_f)

    # 3) class-weighted path, per-sample output
    out_w = cross_entropy_loss(logits, target, weight=weight, reduce=False)
    jax.block_until_ready(out_w)
    ref_w = _reference(logits, target, weight=weight, reduce=False)
    assert jnp.allclose(out_w, ref_w, atol=1e-5, rtol=1e-5), (out_w, ref_w)

    # 4) multi-tile grid: parallel per-row kernel + wrapper mean (reduce=True),
    #    and per-row focal output
    N2 = 24
    kk1, kk2 = jax.random.split(jax.random.PRNGKey(1))
    x2 = jax.random.normal(kk1, (N2, C), dtype=jnp.float32)
    t2 = jax.nn.softmax(jax.random.normal(kk2, (N2, C), dtype=jnp.float32), axis=1)
    loss2 = cross_entropy_loss(x2, t2, tile_n=8)
    jax.block_until_ready(loss2)
    ref2 = _reference(x2, t2)
    assert jnp.allclose(loss2, ref2, atol=1e-5, rtol=1e-5), (loss2, ref2)
    out2 = cross_entropy_loss(x2, t2, focal=True, reduce=False, tile_n=8)
    jax.block_until_ready(out2)
    ref2b = _reference(x2, t2, focal=True, reduce=False)
    assert jnp.allclose(out2, ref2b, atol=1e-5, rtol=1e-5), (out2, ref2b)

    # 5) weighted + reduce=True across multiple tiles (wrapper-side mean)
    loss_w2 = cross_entropy_loss(x2, t2, weight=weight, reduce=True, tile_n=8)
    jax.block_until_ready(loss_w2)
    ref_w2 = _reference(x2, t2, weight=weight, reduce=True)
    assert jnp.allclose(loss_w2, ref_w2, atol=1e-5, rtol=1e-5), (loss_w2, ref_w2)

    print("KERNEL_OK")
</pallas_src>

<mosaic_0001>
module attributes {stable_mosaic.version = 11 : i64} {
  func.func @_ce_kernel(%arg0: i32, %arg1: memref<8x32xf32, #tpu.memory_space<vmem>>, %arg2: memref<8x32xf32, #tpu.memory_space<vmem>>, %arg3: memref<1x1xf32, #tpu.memory_space<vmem>>) attributes {dimension_semantics = [#tpu.dimension_semantics<arbitrary>], iteration_bounds = array<i64: 1>, scalar_prefetch = 0 : i64, scratch_operands = 0 : i64, tpu.core_type = #tpu.core_type<tc>, window_params = [{transform_indices = @transform_0, window_bounds = array<i64: 8, 32>}, {transform_indices = @transform_1, window_bounds = array<i64: 8, 32>}, {pipeline_mode = #tpu.pipeline_mode<synchronous>, transform_indices = @transform_2, window_bounds = array<i64: 1, 1>}]} {
    %c0 = arith.constant 0 : index
    %c0_0 = arith.constant 0 : index
    %0 = vector.load %arg1[%c0, %c0_0] : memref<8x32xf32, #tpu.memory_space<vmem>>, vector<8x32xf32>
    %c0_1 = arith.constant 0 : index
    %c0_2 = arith.constant 0 : index
    %1 = vector.load %arg2[%c0_1, %c0_2] : memref<8x32xf32, #tpu.memory_space<vmem>>, vector<8x32xf32>
    %cst = arith.constant dense<0xFF800000> : vector<8xf32>
    %2 = vector.multi_reduction <maximumf>, %0, %cst [1] : vector<8x32xf32> to vector<8xf32>
    %3 = vector.shape_cast %2 : vector<8xf32> to vector<8x1xf32>
    %4 = vector.broadcast %3 : vector<8x1xf32> to vector<8x32xf32>
    %5 = arith.subf %0, %4 : vector<8x32xf32>
    %6 = math.exp %5 : vector<8x32xf32>
    %cst_3 = arith.constant dense<0.000000e+00> : vector<8xf32>
    %7 = vector.multi_reduction <add>, %6, %cst_3 [1] : vector<8x32xf32> to vector<8xf32>
    %8 = vector.shape_cast %7 : vector<8xf32> to vector<8x1xf32>
    %9 = math.log %8 : vector<8x1xf32>
    %10 = vector.broadcast %9 : vector<8x1xf32> to vector<8x32xf32>
    %11 = arith.subf %5, %10 : vector<8x32xf32>
    %12 = arith.mulf %1, %11 : vector<8x32xf32>
    %cst_4 = arith.constant dense<0.000000e+00> : vector<8xf32>
    %13 = vector.multi_reduction <add>, %12, %cst_4 [1] : vector<8x32xf32> to vector<8xf32>
    %14 = vector.shape_cast %13 : vector<8xf32> to vector<8x1xf32>
    %cst_5 = arith.constant 0.000000e+00 : f32
    %15 = vector.broadcast %cst_5 : f32 to vector<8x1xf32>
    %16 = arith.subf %15, %14 : vector<8x1xf32>
    %c0_i32 = arith.constant 0 : i32
    %17 = arith.cmpi eq, %arg0, %c0_i32 : i32
    %18 = arith.extui %17 : i1 to i32
    %c0_i32_6 = arith.constant 0 : i32
    %19 = arith.cmpi ne, %18, %c0_i32_6 : i32
    scf.if %19 {
      %cst_14 = arith.constant 0.000000e+00 : f32
      %28 = vector.broadcast %cst_14 : f32 to vector<1x1xf32>
      %c0_15 = arith.constant 0 : index
      %c0_16 = arith.constant 0 : index
      %29 = vector.load %arg3[%c0_15, %c0_16] : memref<1x1xf32, #tpu.memory_space<vmem>>, vector<1x1xf32>
      tpu.vector_store %arg3[%c0_15, %c0_16], %28 {strides = array<i32>} : memref<1x1xf32, #tpu.memory_space<vmem>>, vector<1x1xf32>,
    } else {
    }
    %c0_7 = arith.constant 0 : index
    %c0_8 = arith.constant 0 : index
    %20 = vector.load %arg3[%c0_7, %c0_8] : memref<1x1xf32, #tpu.memory_space<vmem>>, vector<1x1xf32>
    %cst_9 = arith.constant dense<0.000000e+00> : vector<1xf32>
    %21 = vector.multi_reduction <add>, %16, %cst_9 [0] : vector<8x1xf32> to vector<1xf32>
    %22 = vector.shape_cast %21 : vector<1xf32> to vector<1x1xf32>
    %23 = arith.addf %20, %22 : vector<1x1xf32>
    %c0_10 = arith.constant 0 : index
    %c0_11 = arith.constant 0 : index
    %24 = vector.load %arg3[%c0_10, %c0_11] : memref<1x1xf32, #tpu.memory_space<vmem>>, vector<1x1xf32>
    tpu.vector_store %arg3[%c0_10, %c0_11], %23 {strides = array<i32>} : memref<1x1xf32, #tpu.memory_space<vmem>>, vector<1x1xf32>,
    %c0_i32_12 = arith.constant 0 : i32
    %25 = arith.cmpi eq, %arg0, %c0_i32_12 : i32
    %26 = arith.extui %25 : i1 to i32
    %c0_i32_13 = arith.constant 0 : i32
    %27 = arith.cmpi ne, %26, %c0_i32_13 : i32
    scf.if %27 {
      %c0_14 = arith.constant 0 : index
      %c0_15 = arith.constant 0 : index
      %28 = vector.load %arg3[%c0_14, %c0_15] : memref<1x1xf32, #tpu.memory_space<vmem>>, vector<1x1xf32>
      %cst_16 = arith.constant 1.250000e-01 : f32
      %29 = vector.broadcast %cst_16 : f32 to vector<1x1xf32>
      %30 = arith.mulf %28, %29 : vector<1x1xf32>
      %c0_17 = arith.constant 0 : index
      %c0_18 = arith.constant 0 : index
      %31 = vector.load %arg3[%c0_17, %c0_18] : memref<1x1xf32, #tpu.memory_space<vmem>>, vector<1x1xf32>
      tpu.vector_store %arg3[%c0_17, %c0_18], %30 {strides = array<i32>} : memref<1x1xf32, #tpu.memory_space<vmem>>, vector<1x1xf32>,
    } else {
    }
    return
  }
  func.func @transform_0(%arg0: i32) -> (i32, i32) {
    %c0_i32 = arith.constant 0 : i32
    %c0_i32_0 = arith.constant 0 : i32
    return %arg0, %c0_i32 : i32, i32
  }
  func.func @transform_1(%arg0: i32) -> (i32, i32) {
    %c0_i32 = arith.constant 0 : i32
    %c0_i32_0 = arith.constant 0 : i32
    return %arg0, %c0_i32 : i32, i32
  }
  func.func @transform_2(%arg0: i32) -> (i32, i32) {
    %c0_i32 = arith.constant 0 : i32
    %c0_i32_0 = arith.constant 0 : i32
    %c0_i32_1 = arith.constant 0 : i32
    return %c0_i32, %c0_i32_0 : i32, i32
  }
}

</mosaic_0001>

<bundles_post_ra>
// kernel: tpu_custom_call.1
= control target key start
LH: loop header
LB: loop body
LE: loop exit
PB: predicated region body
PF: predicated region fallthrough
CT: control target
= control target key end

     0   :  { %7 = vsyncpa [#allocation3], 0  ;;  %s235_s0 = inlined_call_operand.hbm [shape: f32[8,32], index: 0, kind: input, shape index: {}]   ;;  %s236_s1 = inlined_call_operand.hbm [shape: f32[8,32], index: 1, kind: input, shape index: {}]   ;;  %s237_s2 = inlined_call_operand.hbm [shape: f32[1,1], index: 2, kind: output, shape index: {}]  }
   0x1   :  { %8 = vsyncpa [#allocation6], 0 }
   0x2   :  { %9 = vsyncpa [#allocation4], 0  ;;  %s174_s9 = smov [#allocation2]   ;;  %s175_s11 = smov [#allocation5]  }
   0x3   :  { %s16_s10 = sshll.u32 %s174_s9, 4  ;;  %s26_s12 = sshll.u32 %s175_s11, 4  ;;  %s17_s10 = int_to_ptr.vmem [resolvable:$true] %s16_s10  ;;  %s27_s12 = int_to_ptr.vmem [resolvable:$true] %s26_s12 }
   0x4   :  { %s102_s15 = scalar_lea.hbm %s235_s0, 128 }
   0x5   :  { %p103_p0 = scmp.ne.s32.totalorder %s235_s0, %s102_s15  ;;  %p106_p1 = scmp.lt.u32.totalorder %s102_s15, %s235_s0 }
   0x7   :  { %p108_p2 = pnand %p106_p1, %p103_p0 }
   0x9   :  { %111 = shalt.err (!%p108_p2)
}
   0xa   :  { %s112_s20 = scalar_lea.vmem %s17_s10, 128  ;;  %p117_p4 = scmp.lt.s32.totalorder %s17_s10, %s17_s10 }
   0xb   :  { %p113_p3 = scmp.ne.s32.totalorder %s17_s10, %s112_s20  ;;  %p118_p5 = scmp.lt.s32.totalorder %s112_s20, %s112_s20 }
   0xd   :  { %p119_p6 = por %p118_p5, %p117_p4 }
   0xf   :  { %p120_p7 = pnand %p119_p6, %p113_p3 }
  0x11   :  { %123 = shalt.err (!%p120_p7)
}
  0x12   :  { %19 = dma.hbm_to_vmem [thread:$0]  %s235_s0, 128, %s17_s10, [#allocation3]  }
  0x13   :  { %s124_s25 = scalar_lea.hbm %s236_s1, 128 }
  0x14   :  { %p125_p8 = scmp.ne.s32.totalorder %s236_s1, %s124_s25  ;;  %p128_p9 = scmp.lt.u32.totalorder %s124_s25, %s236_s1 }
  0x16   :  { %p130_p10 = pnand %p128_p9, %p125_p8 }
  0x18   :  { %133 = shalt.err (!%p130_p10)
}
  0x19   :  { %s134_s30 = scalar_lea.vmem %s27_s12, 128  ;;  %p139_p12 = scmp.lt.s32.totalorder %s27_s12, %s27_s12 }
  0x1a   :  { %p135_p11 = scmp.ne.s32.totalorder %s27_s12, %s134_s30  ;;  %p140_p13 = scmp.lt.s32.totalorder %s134_s30, %s134_s30 }
  0x1c   :  { %p141_p0 = por %p140_p13, %p139_p12 }
  0x1e   :  { %p142_p1 = pnand %p141_p0, %p135_p11 }
  0x20   :  { %145 = shalt.err (!%p142_p1)
}
  0x21   :  { %29 = dma.hbm_to_vmem [thread:$0]  %s236_s1, 128, %s27_s12, [#allocation6]  }
  0x22   :  { %168 = dma.done.wait [#allocation3], 128  }
  0x23   :  { %169 = vsyncadd [#allocation3], 4294967168 }
  0x24   :  { %170 = dma.done.wait [#allocation6], 128  }
  0x25   :  { %171 = vsyncadd [#allocation6], 4294967168  ;;  %vm38_vm0 = vcmask 261120   ;;  %v36_v0 = vld [vmem:[#allocation2] sm:$0xff]  ;;  %vm60_vm1 = vcmask 0   ;;  %v176_v7 = vmov 0.0  }
  0x26   :  { %v39_v1 = vsel %vm38_vm0, %v36_v0, -inf  ;;  %61 = vst.msk [vmem:[#allocation7] sm:$0x1] %vm60_vm1, %v176_v7  ;;  %v37_v11 = vld [vmem:[#allocation5] sm:$0xff]  ;;  %s177_s1 = smov [#allocation7]  }
  0x27   :  { %40 = vmax.xlane.f32.xlu0 %v39_v1  ;;  %s84_s4 = sshll.u32 %s177_s1, 4  ;;  %s85_s4 = int_to_ptr.vmem [resolvable:$true] %s84_s4 }
  0x28   :  { %s146_s5 = scalar_lea.vmem %s85_s4, 16  ;;  %s150_s6 = scalar_lea.vmem %s85_s4, 32 }
  0x29   :  { %p147_p2 = scmp.ne.s32.totalorder %s85_s4, %s146_s5  ;;  %p151_p3 = scmp.lt.s32.totalorder %s85_s4, %s85_s4 }
  0x2a   :  { %p152_p4 = scmp.lt.s32.totalorder %s150_s6, %s146_s5 }
  0x2c   :  { %p153_p5 = por %p152_p4, %p151_p3 }
  0x2d   :  { %v62_v22 = vld [vmem:[#allocation7] sm:$0x1] }
  0x2e   :  { %p154_p6 = pnand %p153_p5, %p147_p2 }
  0xb4   :  { %v41_v2 = vpop.xlane.xlu0 %40 }
  0xb5   :  { %v42_v3 = vsub.f32 %v36_v0, %v41_v2 }
  0xb7   :  { %v43_v4 = vmul.f32 1.442695, %v42_v3 }
  0xb9   :  { %98 = vpow2.f32 %v43_v4 }
  0xc3   :  { %v99_v5 = vpop.eup %98 }
  0xc4   :  { %v45_v6 = vsel %vm38_vm0, %v99_v5, 0.0 }
  0xc5   :  { %46 = vadd.xlane.f32.xlu0 %v45_v6 }
 0x152   :  { %v47_v8 = vpop.xlane.xlu0 %46 }
 0x153   :  { %100 = vlog2.f32 %v47_v8 }
 0x15d   :  { %v101_v9 = vpop.eup %100 }
 0x15e   :  { %v49_v10 = vmul.f32 0.6931472, %v101_v9 }
 0x160   :  { %v50_v12 = vsub.f32 %v42_v3, %v49_v10 }
 0x162   :  { %v51_v13 = vmul.f32 %v50_v12, %v37_v11 }
 0x164   :  { %v52_v14 = vsel %vm38_vm0, %v51_v13, 0.0 }
 0x165   :  { %53 = vadd.xlane.f32.xlu1 %v52_v14 }
 0x1f2   :  { %v54_v15 = vpop.xlane.xlu1 %53 }
 0x1f3   :  { %v55_v16 = vsub.f32 0.0, %v54_v15 }
 0x1f5   :  { %v63_v17 = vrot.slane %v55_v16, 4 }
 0x1f7   :  { %v64_v18 = vadd.f32 %v63_v17, %v55_v16 }
 0x1f9   :  { %v65_v19 = vrot.slane %v64_v18, 2 }
 0x1fb   :  { %v66_v20 = vadd.f32 %v65_v19, %v64_v18 }
 0x1fd   :  { %v67_v21 = vrot.slane %v66_v20, 1 }
 0x1ff   :  { %v68_v23 = vadd.f32 %v67_v21, %v66_v20 }
 0x201   :  { %v69_v24 = vadd.f32 %v68_v23, %v62_v22 }
 0x203   :  { %71 = vst.msk [vmem:[#allocation7] sm:$0x1] %vm60_vm1, %v69_v24 }
 0x20a   :  { %v75_v25 = vld [vmem:[#allocation7] sm:$0x1] }
 0x20b   :  { %v76_v26 = vmul.f32 0.125, %v75_v25 }
 0x20d   :  { %77 = vst.msk [vmem:[#allocation7] sm:$0x1] %vm60_vm1, %v76_v26 }
 0x20e   :  { %157 = shalt.err (!%p154_p6)
}
 0x20f   :  { %s158_s9 = scalar_lea.hbm %s237_s2, 16 }
 0x210   :  { %p159_p7 = scmp.ne.s32.totalorder %s237_s2, %s158_s9  ;;  %p162_p8 = scmp.lt.u32.totalorder %s158_s9, %s237_s2 }
 0x212   :  { %p164_p9 = pnand %p162_p8, %p159_p7 }
 0x214   :  { %167 = shalt.err (!%p164_p9)
}
 0x215   :  { %87 = dma.vmem_to_hbm [thread:$0]  %s85_s4, 16, %s237_s2, [#allocation4]  }
 0x216   :  { %172 = dma.done.wait [#allocation4], 16  }
 0x217   :  { %173 = vsyncadd [#allocation4], 4294967280 }
 0x218   :  { %91 = vsyncpa [#allocation3], 1 }
 0x219   :  { %92 = vsyncpa [#allocation6], 1 }
 0x21a   :  { %93 = vsyncpa [#allocation4], 1 }

</bundles_post_ra>
